<compile_context>
chip_gen: v6e
topology: v6e:2x2x1
jax: 0.10.0
libtpu: 0.0.40
codegen_flags: <defaults>
</compile_context>

<pallas_src>
import jax
import jax.numpy as jnp
from jax.experimental import pallas as pl
from jax.experimental.pallas import tpu as pltpu


def _round_up(x, m):
    return (x + m - 1) // m * m


def make_ngram_kernel(context_size, vocab_padded):
    C, Vp = context_size, vocab_padded

    def kernel(flat_idx_ref, m_ref, b1_ref, w2_ref, b2_ref, out_ref):
        # flat_idx_ref : (TB, C) int32, already offset so slot c lives in lane
        #                range [c*Vp, (c+1)*Vp)
        # m_ref        : (C*Vp, H) bf16 folded (Emb @ W1_c^T) blocks, stacked
        # b1_ref       : (1, H)  f32
        # w2_ref       : (H, Vp) bf16 (padded cols zero)
        # b2_ref       : (1, Vp) f32  (padded entries -1e30)
        TB = out_ref.shape[0]
        CVp = C * Vp

        # Combined one-hot across all context positions (disjoint lane ranges),
        # built with pure VPU compares; exact 0/1 values in bf16.
        lane = jax.lax.broadcasted_iota(jnp.int32, (TB, CVp), 1)
        hit = lane == flat_idx_ref[:, 0:1]
        for c in range(1, C):                       # static unroll, C is tiny
            hit = hit | (lane == flat_idx_ref[:, c:c + 1])
        onehot = hit.astype(m_ref.dtype)            # (TB, C*Vp) bf16

        # Fused embedding-gather + linear1: a single MXU matmul (f32 accum).
        acc = jnp.dot(onehot, m_ref[...],
                      preferred_element_type=jnp.float32)          # (TB, H)
        h = jnp.maximum(acc + b1_ref[...], 0.0)                    # ReLU, f32

        logits = jnp.dot(h.astype(w2_ref.dtype), w2_ref[...],
                         preferred_element_type=jnp.float32) + b2_ref[...]  # (TB, Vp)

        # Numerically stable log_softmax along lanes; padded columns have
        # logits ~ -1e30 so exp() contributes 0 to the logsumexp.
        m = jnp.max(logits, axis=-1, keepdims=True)
        s = logits - m
        lse = jnp.log(jnp.sum(jnp.exp(s), axis=-1, keepdims=True))
        out_ref[...] = (s - lse).astype(out_ref.dtype)

    return kernel


def prepare_params(emb_table, w1, b1, w2, b2, *, lane=128):
    """One-time parameter prep: fold Emb into W1, transpose, pad vocab, cast
    to bf16 (hoisted out of the per-call forward path)."""
    V, E = emb_table.shape
    H, in_dim = w1.shape
    assert in_dim % E == 0
    C = in_dim // E
    assert w2.shape == (V, H)
    Vp = _round_up(V, lane)

    emb32 = emb_table.astype(jnp.float32)
    w1_32 = w1.astype(jnp.float32)

    # M_c = Emb @ W1_c^T : (V, H) per context slot, f32 product -> single bf16
    # rounding; stacked along rows -> (C*Vp, H), padded rows are zero.
    blocks = []
    for c in range(C):
        m_c = emb32 @ w1_32[:, c * E:(c + 1) * E].T                 # (V, H)
        blocks.append(jnp.zeros((Vp, H), jnp.float32).at[:V].set(m_c))
    m_all = jnp.concatenate(blocks, axis=0).astype(jnp.bfloat16)    # (C*Vp, H)

    b1_2d = b1.astype(jnp.float32).reshape(1, H)
    w2_t = jnp.zeros((H, Vp), jnp.bfloat16).at[:, :V].set(
        w2.T.astype(jnp.bfloat16))                                  # (H, Vp)
    # Padded logits get -1e30 so they drop out of the softmax normalization.
    b2_2d = jnp.full((1, Vp), -1e30, jnp.float32).at[0, :V].set(
        b2.astype(jnp.float32))

    return dict(m_all=m_all, b1=b1_2d, w2_t=w2_t, b2=b2_2d,
                vocab_size=V, vocab_padded=Vp, embedding_dim=E,
                hidden=H, context_size=C)


def ngram_forward(inputs, params, *, tile_b=None, out_dtype=jnp.float32):
    """inputs: (B, context_size) int32 token ids. Returns (B, vocab) log-probs."""
    B, C = inputs.shape
    assert C == params["context_size"]
    V, Vp, H = params["vocab_size"], params["vocab_padded"], params["hidden"]
    m_all, b1_2d, w2_t, b2_2d = (params["m_all"], params["b1"],
                                 params["w2_t"], params["b2"])
    CVp = C * Vp

    if tile_b is None:
        # Sublane-aligned, capped at 128 so MXU rows aren't wasted on padding.
        tile_b = min(128, _round_up(B, 8))
    Bp = _round_up(B, tile_b)
    nb = Bp // tile_b

    # Offset context slot c into lane range [c*Vp, (c+1)*Vp); pad batch rows
    # with index 0 (valid, results discarded).
    offs = (jnp.arange(C, dtype=jnp.int32) * Vp)[None, :]
    flat_idx = jnp.zeros((Bp, C), jnp.int32).at[:B].set(
        inputs.astype(jnp.int32) + offs)

    const = lambda shape: pl.BlockSpec(shape, lambda i: (0,) * len(shape))

    out = pl.pallas_call(
        make_ngram_kernel(C, Vp),
        out_shape=jax.ShapeDtypeStruct((Bp, Vp), out_dtype),
        grid=(nb,),
        in_specs=[
            pl.BlockSpec((tile_b, C), lambda i: (i, 0)),   # flat context ids
            const((CVp, H)),        # folded emb+linear1 weights (resident)
            const((1, H)),          # b1                         (resident)
            const((H, Vp)),         # W2^T                       (resident)
            const((1, Vp)),         # b2 (padded lanes -1e30)    (resident)
        ],
        out_specs=pl.BlockSpec((tile_b, Vp), lambda i: (i, 0)),
        compiler_params=pltpu.CompilerParams(
            dimension_semantics=("parallel",),      # shard batch tiles (v7x)
            vmem_limit_bytes=32 * 1024 * 1024,      # ample headroom everywhere
        ),
    )(flat_idx, m_all, b1_2d, w2_t, b2_2d)

    # TODO(synk): for production-scale vocab, add a vocab grid axis with an
    # online logsumexp and replace the one-hot gather with a scalar-prefetch
    # DMA row gather so the folded (C*Vp, H) matrix need not be VMEM-resident.
    return out[:B, :V]


def reference_forward_kernel_numerics(inputs, emb_table, w1, b1, w2, b2):
    """Pure-JAX reference matching the kernel's folded-bf16 / f32-accum numerics."""
    B, C = inputs.shape
    V, E = emb_table.shape
    H = w1.shape[0]
    h = jnp.zeros((B, H), jnp.float32)
    for c in range(C):
        m_c = (emb_table.astype(jnp.float32)
               @ w1[:, c * E:(c + 1) * E].T.astype(jnp.float32)).astype(jnp.bfloat16)
        h = h + m_c[inputs[:, c]].astype(jnp.float32)
    h = jnp.maximum(h + b1.astype(jnp.float32), 0.0)
    logits = jnp.dot(h.astype(jnp.bfloat16), w2.T.astype(jnp.bfloat16),
                     preferred_element_type=jnp.float32) + b2
    return jax.nn.log_softmax(logits, axis=1)


def reference_forward_f32(inputs, emb_table, w1, b1, w2, b2):
    """Full-f32 reference matching the original PyTorch module exactly."""
    B, C = inputs.shape
    E = emb_table.shape[1]
    x = jnp.take(emb_table, inputs, axis=0).reshape(B, C * E)
    h = jnp.maximum(x @ w1.T + b1, 0.0)
    logits = h @ w2.T + b2
    return jax.nn.log_softmax(logits, axis=1)


if __name__ == "__main__":
    # Small shapes consistent with the module.
    vocab_size = 64
    embedding_dim = 16
    context_size = 2
    hidden = 128
    batch = 8

    key = jax.random.PRNGKey(0)
    k_emb, k_w1, k_b1, k_w2, k_b2, k_in = jax.random.split(key, 6)

    emb_table = jax.random.normal(k_emb, (vocab_size, embedding_dim), jnp.float32)
    w1 = jax.random.normal(k_w1, (hidden, context_size * embedding_dim), jnp.float32) * 0.1
    b1 = jax.random.normal(k_b1, (hidden,), jnp.float32) * 0.1
    w2 = jax.random.normal(k_w2, (vocab_size, hidden), jnp.float32) * 0.1
    b2 = jax.random.normal(k_b2, (vocab_size,), jnp.float32) * 0.1
    inputs = jax.random.randint(k_in, (batch, context_size), 0, vocab_size, jnp.int32)

    params = prepare_params(emb_table, w1, b1, w2, b2)
    out = ngram_forward(inputs, params)
    out = jax.block_until_ready(out)

    assert out.shape == (batch, vocab_size)

    ref_kn = reference_forward_kernel_numerics(inputs, emb_table, w1, b1, w2, b2)
    assert jnp.allclose(out, ref_kn, atol=2e-2, rtol=2e-2), \
        "mismatch vs folded-bf16 JAX reference"

    ref_f32 = reference_forward_f32(inputs, emb_table, w1, b1, w2, b2)
    assert jnp.allclose(out, ref_f32, atol=5e-2, rtol=5e-2), \
        "mismatch vs full-f32 JAX reference"

    print("KERNEL_OK")
</pallas_src>

<mosaic_0001>
module attributes {stable_mosaic.version = 11 : i64} {
  func.func @kernel(%arg0: i32, %arg1: memref<8x2xi32, #tpu.memory_space<vmem>>, %arg2: memref<256x128xbf16, #tpu.memory_space<vmem>>, %arg3: memref<1x128xf32, #tpu.memory_space<vmem>>, %arg4: memref<128x128xbf16, #tpu.memory_space<vmem>>, %arg5: memref<1x128xf32, #tpu.memory_space<vmem>>, %arg6: memref<8x128xf32, #tpu.memory_space<vmem>>) attributes {dimension_semantics = [#tpu.dimension_semantics<parallel>], iteration_bounds = array<i64: 1>, scalar_prefetch = 0 : i64, scratch_operands = 0 : i64, tpu.core_type = #tpu.core_type<tc>, window_params = [{transform_indices = @transform_0, window_bounds = array<i64: 8, 2>}, {pipeline_mode = #tpu.pipeline_mode<synchronous>, transform_indices = @transform_1, window_bounds = array<i64: 256, 128>}, {pipeline_mode = #tpu.pipeline_mode<synchronous>, transform_indices = @transform_2, window_bounds = array<i64: 1, 128>}, {pipeline_mode = #tpu.pipeline_mode<synchronous>, transform_indices = @transform_3, window_bounds = array<i64: 128, 128>}, {pipeline_mode = #tpu.pipeline_mode<synchronous>, transform_indices = @transform_4, window_bounds = array<i64: 1, 128>}, {transform_indices = @transform_5, window_bounds = array<i64: 8, 128>}]} {
    %0 = tpu.iota {dimensions = array<i32: 1>} : vector<8x256xi32>
    %c0 = arith.constant 0 : index
    %c0_0 = arith.constant 0 : index
    %1 = vector.load %arg1[%c0, %c0_0] : memref<8x2xi32, #tpu.memory_space<vmem>>, vector<8x1xi32>
    %2 = vector.broadcast %1 : vector<8x1xi32> to vector<8x256xi32>
    %3 = arith.cmpi eq, %0, %2 : vector<8x256xi32>
    %c0_1 = arith.constant 0 : index
    %c1 = arith.constant 1 : index
    %4 = vector.load %arg1[%c0_1, %c1] : memref<8x2xi32, #tpu.memory_space<vmem>>, vector<8x1xi32>
    %5 = vector.broadcast %4 : vector<8x1xi32> to vector<8x256xi32>
    %6 = arith.cmpi eq, %0, %5 : vector<8x256xi32>
    %7 = arith.ori %3, %6 : vector<8x256xi1>
    %8 = arith.extui %7 : vector<8x256xi1> to vector<8x256xi32>
    %9 = arith.sitofp %8 : vector<8x256xi32> to vector<8x256xf32>
    %10 = arith.truncf %9 : vector<8x256xf32> to vector<8x256xbf16>
    %c0_2 = arith.constant 0 : index
    %c0_3 = arith.constant 0 : index
    %11 = vector.load %arg2[%c0_2, %c0_3] : memref<256x128xbf16, #tpu.memory_space<vmem>>, vector<256x128xbf16>
    %cst = arith.constant dense<0.000000e+00> : vector<8x128xf32>
    %12 = tpu.matmul %10, %11, %cst {dimension_numbers = #tpu.dot_dimension_numbers<[1], [0], [0], [1], [0, 0, 1, 1], [], []>} : vector<8x256xbf16>, vector<256x128xbf16>, vector<8x128xf32> -> vector<8x128xf32>
    %c0_4 = arith.constant 0 : index
    %c0_5 = arith.constant 0 : index
    %13 = vector.load %arg3[%c0_4, %c0_5] : memref<1x128xf32, #tpu.memory_space<vmem>>, vector<1x128xf32>
    %14 = vector.broadcast %13 : vector<1x128xf32> to vector<8x128xf32>
    %15 = arith.addf %12, %14 : vector<8x128xf32>
    %cst_6 = arith.constant 0.000000e+00 : f32
    %16 = vector.broadcast %cst_6 : f32 to vector<8x128xf32>
    %17 = arith.maximumf %15, %16 : vector<8x128xf32>
    %18 = arith.truncf %17 : vector<8x128xf32> to vector<8x128xbf16>
    %c0_7 = arith.constant 0 : index
    %c0_8 = arith.constant 0 : index
    %19 = vector.load %arg4[%c0_7, %c0_8] : memref<128x128xbf16, #tpu.memory_space<vmem>>, vector<128x128xbf16>
    %cst_9 = arith.constant dense<0.000000e+00> : vector<8x128xf32>
    %20 = tpu.matmul %18, %19, %cst_9 {dimension_numbers = #tpu.dot_dimension_numbers<[1], [0], [0], [1], [0, 0, 1, 1], [], []>} : vector<8x128xbf16>, vector<128x128xbf16>, vector<8x128xf32> -> vector<8x128xf32>
    %c0_10 = arith.constant 0 : index
    %c0_11 = arith.constant 0 : index
    %21 = vector.load %arg5[%c0_10, %c0_11] : memref<1x128xf32, #tpu.memory_space<vmem>>, vector<1x128xf32>
    %22 = vector.broadcast %21 : vector<1x128xf32> to vector<8x128xf32>
    %23 = arith.addf %20, %22 : vector<8x128xf32>
    %cst_12 = arith.constant dense<0xFF800000> : vector<8xf32>
    %24 = vector.multi_reduction <maximumf>, %23, %cst_12 [1] : vector<8x128xf32> to vector<8xf32>
    %25 = vector.shape_cast %24 : vector<8xf32> to vector<8x1xf32>
    %26 = vector.broadcast %25 : vector<8x1xf32> to vector<8x128xf32>
    %27 = arith.subf %23, %26 : vector<8x128xf32>
    %28 = math.exp %27 : vector<8x128xf32>
    %cst_13 = arith.constant dense<0.000000e+00> : vector<8xf32>
    %29 = vector.multi_reduction <add>, %28, %cst_13 [1] : vector<8x128xf32> to vector<8xf32>
    %30 = vector.shape_cast %29 : vector<8xf32> to vector<8x1xf32>
    %31 = math.log %30 : vector<8x1xf32>
    %32 = vector.broadcast %31 : vector<8x1xf32> to vector<8x128xf32>
    %33 = arith.subf %27, %32 : vector<8x128xf32>
    %c0_14 = arith.constant 0 : index
    %c0_15 = arith.constant 0 : index
    %34 = vector.load %arg6[%c0_14, %c0_15] : memref<8x128xf32, #tpu.memory_space<vmem>>, vector<8x128xf32>
    tpu.vector_store %arg6[%c0_14, %c0_15], %33 {strides = array<i32>} : memref<8x128xf32, #tpu.memory_space<vmem>>, vector<8x128xf32>,
    return
  }
  func.func @transform_0(%arg0: i32) -> (i32, i32) {
    %c0_i32 = arith.constant 0 : i32
    %c0_i32_0 = arith.constant 0 : i32
    return %arg0, %c0_i32 : i32, i32
  }
  func.func @transform_1(%arg0: i32) -> (i32, i32) {
    %c0_i32 = arith.constant 0 : i32
    %c0_i32_0 = arith.constant 0 : i32
    %c0_i32_1 = arith.constant 0 : i32
    return %c0_i32, %c0_i32_0 : i32, i32
  }
  func.func @transform_2(%arg0: i32) -> (i32, i32) {
    %c0_i32 = arith.constant 0 : i32
    %c0_i32_0 = arith.constant 0 : i32
    %c0_i32_1 = arith.constant 0 : i32
    return %c0_i32, %c0_i32_0 : i32, i32
  }
  func.func @transform_3(%arg0: i32) -> (i32, i32) {
    %c0_i32 = arith.constant 0 : i32
    %c0_i32_0 = arith.constant 0 : i32
    %c0_i32_1 = arith.constant 0 : i32
    return %c0_i32, %c0_i32_0 : i32, i32
  }
  func.func @transform_4(%arg0: i32) -> (i32, i32) {
    %c0_i32 = arith.constant 0 : i32
    %c0_i32_0 = arith.constant 0 : i32
    %c0_i32_1 = arith.constant 0 : i32
    return %c0_i32, %c0_i32_0 : i32, i32
  }
  func.func @transform_5(%arg0: i32) -> (i32, i32) {
    %c0_i32 = arith.constant 0 : i32
    %c0_i32_0 = arith.constant 0 : i32
    return %arg0, %c0_i32 : i32, i32
  }
}

</mosaic_0001>

<bundles_post_ra>
// kernel: tpu_custom_call.1
= control target key start
LH: loop header
LB: loop body
LE: loop exit
PB: predicated region body
PF: predicated region fallthrough
CT: control target
= control target key end

     0   :  { %10 = vsyncpa [#allocation3], 0  ;;  %s634_s0 = inlined_call_operand.vmem [shape: s32[8,2], index: 0, kind: input, shape index: {}]   ;;  %s635_s1 = inlined_call_operand.hbm [shape: bf16[256,128], index: 1, kind: input, shape index: {}]   ;;  %s636_s2 = inlined_call_operand.vmem [shape: f32[1,128], index: 2, kind: input, shape index: {}]   ;;  %s637_s3 = inlined_call_operand.hbm [shape: bf16[128,128], index: 3, kind: input, shape index: {}]   ;;  %s638_s4 = inlined_call_operand.vmem [shape: f32[1,128], index: 4, kind: input, shape index: {}]   ;;  %s639_s5 = inlined_call_operand.hbm [shape: f32[8,128], index: 5, kind: output, shape index: {}]  }
   0x1   :  { %11 = vsyncpa [#allocation6], 0 }
   0x2   :  { %12 = vsyncpa [#allocation4], 0  ;;  %s576_s18 = smov [#allocation2]  }
   0x3   :  { %s20_s19 = sshll.u32 %s576_s18, 4  ;;  %s21_s19 = int_to_ptr.vmem [resolvable:$true] %s20_s19 }
   0x4   :  { %s518_s20 = scalar_lea.vmem %s21_s19, 2048  ;;  %p523_p1 = scmp.lt.s32.totalorder %s21_s19, %s21_s19 }
   0x5   :  { %p519_p0 = scmp.ne.s32.totalorder %s21_s19, %s518_s20  ;;  %p524_p2 = scmp.lt.s32.totalorder %s518_s20, %s518_s20 }
   0x7   :  { %p525_p3 = por %p524_p2, %p523_p1 }
   0x9   :  { %p526_p4 = pnand %p525_p3, %p519_p0 }
   0xb   :  { %529 = shalt.err (!%p526_p4)
}
   0xc   :  { %s577_s21 = smov 64   ;;  %s578_s22 = smov 4  }
   0xd   :  { %26 = dma.hbm_to_vmem [thread:$0]  %s635_s1, 2048, %s21_s19, [#allocation3], %s577_s21, %s577_s21, %s578_s22  }
   0xe   :  { %s579_s25 = smov [#allocation5]  }
   0xf   :  { %s34_s26 = sshll.u32 %s579_s25, 4  ;;  %s35_s26 = int_to_ptr.vmem [resolvable:$true] %s34_s26 }
  0x10   :  { %s538_s27 = scalar_lea.vmem %s35_s26, 1024  ;;  %p543_p6 = scmp.lt.s32.totalorder %s35_s26, %s35_s26 }
  0x11   :  { %p539_p5 = scmp.ne.s32.totalorder %s35_s26, %s538_s27  ;;  %p544_p7 = scmp.lt.s32.totalorder %s538_s27, %s538_s27 }
  0x13   :  { %p545_p8 = por %p544_p7, %p543_p6 }
  0x15   :  { %p546_p9 = pnand %p545_p8, %p539_p5 }
  0x17   :  { %549 = shalt.err (!%p546_p9)
}
  0x18   :  { %40 = dma.hbm_to_vmem [thread:$0]  %s637_s3, 1024, %s35_s26, [#allocation6], %s577_s21, %s577_s21, %s578_s22  }
  0x19   :  { %570 = dma.done.wait [#allocation3], 2048  }
  0x1a   :  { %571 = vsyncadd [#allocation3], 4294965248 }
  0x1b   :  { %572 = dma.done.wait [#allocation6], 1024  }
  0x1c   :  { %573 = vsyncadd [#allocation6], 4294966272  ;;  %v580_v0 = vmov 0   ;;  %v53_v1 = vld [vmem:[%s634_s0] sm:$0xff]  ;;  %v482_v2 = vld [vmem:[#allocation2 + $0x78] sm:$0xff]   ;;  %v581_v6 = vmov 1   ;;  %v50_v25 = vlaneseq }
  0x1d   :  { %480 = vset.pattern.permute.xlu0 %v580_v0  ;;  %v483_v3 = vld [vmem:[#allocation2 + $0x38] sm:$0xff]   ;;  %419 = vmatprep.subr.bf16.mxu0 %v482_v2  ;;  %v484_v4 = vld [vmem:[#allocation2 + $0x70] sm:$0xff]   ;;  %v486_v7 = vld [vmem:[#allocation2 + $0x68] sm:$0xff]   ;;  %v582_v10 = vmov 0.0   ;;  %v583_v30 = vmov 1.0|1.0  }
  0x1e   :  { %55 = vperm.xlu0 %480, %v53_v1   ;;  %420 = vmatpush3.bf16.msra.mxu0 %v483_v3  ;;  %v485_v5 = vld [vmem:[#allocation2 + $0x30] sm:$0xff]   ;;  %v487_v8 = vld [vmem:[#allocation2 + $0x28] sm:$0xff]   ;;  %v488_v9 = vld [vmem:[#allocation2 + $0x60] sm:$0xff]   ;;  %v51_v26 = vand.u32 127, %v50_v25  ;;  %vm584_vm8 = vmmov 0  }
  0x1f   :  { %421 = vmatprep.subr.bf16.mxu0 %v484_v4  ;;  %450 = vmatprep.subr.bf16.mxu1 %v582_v10  ;;  %v489_v11 = vld [vmem:[#allocation2 + $0x20] sm:$0xff]   ;;  %v490_v12 = vld [vmem:[#allocation2 + $0x58] sm:$0xff]   ;;  %v492_v14 = vld [vmem:[#allocation2 + $0x50] sm:$0xff]  }
  0x20   :  { %v491_v13 = vld [vmem:[#allocation2 + $0x18] sm:$0xff]   ;;  %v499_v16 = vld [vmem:[#allocation5 + $0x30] sm:$0xff]   ;;  %v494_v18 = vld [vmem:[#allocation2 + $0x48] sm:$0xff]   ;;  %v52_v28 = vadd.s32 128, %v51_v26  ;;  %466 = vmatprep.mubr.msk.bf16.mxu1 %vm584_vm8, %v582_v10 }
  0x21   :  { %v498_v15 = vld [vmem:[#allocation5 + $0x38] sm:$0xff]   ;;  %v493_v17 = vld [vmem:[#allocation2 + $0x10] sm:$0xff]   ;;  %v500_v19 = vld [vmem:[#allocation5 + $0x28] sm:$0xff]  }
  0x22   :  { %481 = vset.pattern.permute.xlu0 %v581_v6  ;;  %422 = vmatpush3.bf16.msra.mxu0 %v485_v5  ;;  %v495_v20 = vld [vmem:[#allocation2 + $0x8] sm:$0xff]   ;;  %v496_v21 = vld [vmem:[#allocation2 + $0x40] sm:$0xff]   ;;  %v502_v24 = vld [vmem:[#allocation5 + $0x18] sm:$0xff]  }
  0x23   :  { %60 = vperm.xlu0 %481, %v53_v1   ;;  %423 = vmatprep.subr.bf16.mxu0 %v486_v7  ;;  %v501_v22 = vld [vmem:[#allocation5 + $0x20] sm:$0xff]   ;;  %v503_v31 = vld [vmem:[#allocation5 + $0x10] sm:$0xff]   ;;  %v504_v32 = vld [vmem:[#allocation5 + $0x8] sm:$0xff]  }
  0x24   :  { %451 = vmatpush3.bf16.msra.mxu1 %v498_v15  ;;  %v497_v23 = vld [vmem:[#allocation2] sm:$0xff]  }
  0x25   :  { %452 = vmatprep.subr.bf16.mxu1 %v582_v10  ;;  %v505_v33 = vld [vmem:[#allocation5] sm:$0xff]  }
  0x26   :  { %424 = vmatpush3.bf16.msra.mxu0 %v487_v8  ;;  %v389_v35 = vld [vmem:[%s636_s2] ss:$0 sm:$0xff]  ;;  %s585_s2 = smov [#allocation7]  }
  0x27   :  { %425 = vmatprep.subr.bf16.mxu0 %v488_v9  ;;  %v410_v43 = vld [vmem:[%s638_s4] ss:$0 sm:$0xff]  ;;  %s377_s8 = sshll.u32 %s585_s2, 4  ;;  %s378_s8 = int_to_ptr.vmem [resolvable:$true] %s377_s8 }
  0x28   :  { %453 = vmatpush3.bf16.msra.mxu1 %v499_v16  ;;  %s550_s4 = scalar_lea.vmem %s378_s8, 128  ;;  %p555_p11 = scmp.lt.s32.totalorder %s378_s8, %s378_s8 }
  0x29   :  { %454 = vmatprep.subr.bf16.mxu1 %v582_v10  ;;  %p551_p10 = scmp.ne.s32.totalorder %s378_s8, %s550_s4  ;;  %p556_p12 = scmp.lt.s32.totalorder %s550_s4, %s550_s4 }
  0x2a   :  { %426 = vmatpush3.bf16.msra.mxu0 %v489_v11 }
  0x2b   :  { %427 = vmatprep.subr.bf16.mxu0 %v490_v12  ;;  %p557_p13 = por %p556_p12, %p555_p11 }
  0x2c   :  { %455 = vmatpush3.bf16.msra.mxu1 %v500_v19 }
  0x2d   :  { %456 = vmatprep.subr.bf16.mxu1 %v582_v10  ;;  %p558_p0 = pnand %p557_p13, %p551_p10 }
  0x2e   :  { %428 = vmatpush3.bf16.msra.mxu0 %v491_v13 }
  0x2f   :  { %429 = vmatprep.subr.bf16.mxu0 %v492_v14 }
  0x30   :  { %457 = vmatpush3.bf16.msra.mxu1 %v501_v22 }
  0x31   :  { %458 = vmatprep.subr.bf16.mxu1 %v582_v10 }
  0x32   :  { %430 = vmatpush3.bf16.msra.mxu0 %v493_v17 }
  0x33   :  { %431 = vmatprep.subr.bf16.mxu0 %v494_v18 }
  0x34   :  { %459 = vmatpush3.bf16.msra.mxu1 %v502_v24 }
  0x35   :  { %460 = vmatprep.subr.bf16.mxu1 %v582_v10 }
  0x36   :  { %432 = vmatpush3.bf16.msra.mxu0 %v495_v20 }
  0x37   :  { %433 = vmatprep.subr.bf16.mxu0 %v496_v21 }
  0x38   :  { %461 = vmatpush3.bf16.msra.mxu1 %v503_v31 }
  0x39   :  { %462 = vmatprep.subr.bf16.mxu1 %v582_v10 }
  0x3a   :  { %434 = vmatpush3.bf16.msra.mxu0 %v497_v23 }
  0x3c   :  { %463 = vmatpush3.bf16.msra.mxu1 %v504_v32 }
  0x3d   :  { %464 = vmatprep.subr.bf16.mxu1 %v582_v10 }
  0x40   :  { %465 = vmatpush3.bf16.msra.mxu1 %v505_v33 }
  0x99   :  { %v56_v27 = vpop.permute.xlu0 %55 }
  0x9a   :  { %vm57_vm0 = vcmp.eq.s32.totalorder %v51_v26, %v56_v27  ;;  %vm58_vm5 = vcmp.eq.s32.totalorder %v52_v28, %v56_v27 }
  0x9e   :  { %v61_v29 = vpop.permute.xlu0 %60 }
  0x9f   :  { %vm62_vm1 = vcmp.eq.s32.totalorder %v51_v26, %v61_v29  ;;  %vm63_vm2 = vcmp.eq.s32.totalorder %v52_v28, %v61_v29 }
  0xa0   :  { %vm64_vm3 = vmor %vm57_vm0, %vm62_vm1 }
  0xa1   :  { %vm408_vm4 = vmpackc.low %vm64_vm3, %vm64_vm3 }
  0xa2   :  { %vm65_vm6 = vmor %vm58_vm5, %vm63_vm2 }
  0xa3   :  { %vm406_vm7 = vmpackc.low %vm65_vm6, %vm65_vm6 }
  0xa4   :  { %407 = vmatprep.mubr.msk.bf16.mxu0 %vm406_vm7, %v583_v30 }
  0xa5   :  { %409 = vmatmul.mubr.msk.bf16.vlgmr.msra.gmra.mxu0 %vm408_vm4, %v583_v30 }
 0x165   :  { %v435_v34 = vpop.f32.mrf.mxu0 }
 0x167   :  { %v436_v36 = vpop.f32.mrf.mxu0 }
 0x168   :  { %v437_v37 = vadd.f32 %v436_v36, %v435_v34 }
 0x169   :  { %v438_v38 = vpop.f32.mrf.mxu0 }
 0x16a   :  { %v242_v39 = vadd.f32 %v437_v37, %v389_v35 }
 0x16b   :  { %v439_v40 = vpop.f32.mrf.mxu0 }
 0x16c   :  { %v247_v41 = vmax.f32 %v242_v39, 0.0 }
 0x16e   :  { %v248_v42 = vpack.c.bf16 %v247_v41, %v247_v41 }
 0x170   :  { %467 = vmatmul.mubr.bf16.vlgmr.msra.gmra.mxu1 %v248_v42 }
 0x230   :  { %v354_v44 = vpop.f32.mrf.mxu1 }
 0x231   :  { %v355_v45 = vadd.f32 %v410_v43, %v354_v44 }
 0x232   :  { %v468_v46 = vpop.f32.mrf.mxu1 }
 0x233   :  { %360 = vmax.xlane.f32.xlu1 %v355_v45 }
 0x234   :  { %v357_v47 = vpop.f32.mrf.mxu1 }
 0x236   :  { %v469_v48 = vpop.f32.mrf.mxu1 }
 0x2bc   :  { %v361_v49 = vpop.xlane.xlu1 %360 }
 0x2bd   :  { %v362_v50 = vsub.f32 %v355_v45, %v361_v49 }
 0x2bf   :  { %v363_v51 = vmul.f32 1.442695, %v362_v50 }
 0x2c1   :  { %506 = vpow2.f32 %v363_v51 }
 0x2ce   :  { %v507_v52 = vpop.eup %506 }
 0x2cf   :  { %365 = vadd.xlane.f32.xlu1 %v507_v52 }
 0x358   :  { %v366_v53 = vpop.xlane.xlu1 %365 }
 0x359   :  { %508 = vlog2.f32 %v366_v53 }
 0x366   :  { %v509_v54 = vpop.eup %508 }
 0x367   :  { %v368_v55 = vmul.f32 0.6931472, %v509_v54 }
 0x369   :  { %v369_v56 = vsub.f32 %v362_v50, %v368_v55 }
 0x36b   :  { %370 = vst [vmem:[#allocation7] sm:$0xff] %v369_v56 }
 0x36c   :  { %561 = shalt.err (!%p558_p0)
}
 0x36d   :  { %380 = dma.vmem_to_hbm [thread:$0]  %s378_s8, 128, %s639_s5, [#allocation4]  }
 0x36e   :  { %574 = dma.done.wait [#allocation4], 128  }
 0x36f   :  { %575 = vsyncadd [#allocation4], 4294967168 }
 0x370   :  { %384 = vsyncpa [#allocation3], 1 }
 0x371   :  { %385 = vsyncpa [#allocation6], 1 }
 0x372   :  { %386 = vsyncpa [#allocation4], 1 }

</bundles_post_ra>
